<compile_context>
chip_gen: v6e
topology: v6e:2x2x1
jax: 0.10.0
libtpu: 0.0.40
codegen_flags: <defaults>
</compile_context>

<pallas_src>
import jax
import jax.numpy as jnp
from jax.experimental import pallas as pl
from jax.experimental.pallas import tpu as pltpu


# -----------------------------------------------------------------------------
# Path 1 (primary): single HBM->HBM DMA, no VMEM staging.
# -----------------------------------------------------------------------------
def _hbm_copy_kernel(x_hbm, o_hbm, sem):
    cp = pltpu.make_async_copy(x_hbm, o_hbm, sem)
    cp.start()
    cp.wait()


def pallas_identity_dma(x: jax.Array) -> jax.Array:
    """Identity copy as one HBM->HBM DMA (no VMEM round trip, no vld/vst)."""
    total_bytes = int(x.size) * int(x.dtype.itemsize)
    return pl.pallas_call(
        _hbm_copy_kernel,
        out_shape=jax.ShapeDtypeStruct(x.shape, x.dtype),
        in_specs=[pl.BlockSpec(memory_space=pl.ANY)],
        out_specs=pl.BlockSpec(memory_space=pl.ANY),
        scratch_shapes=[pltpu.SemaphoreType.DMA],
        cost_estimate=pl.CostEstimate(
            flops=0, transcendentals=0, bytes_accessed=2 * total_bytes
        ),
    )(x)


# -----------------------------------------------------------------------------
# Path 2: robust cdiv-tiled VMEM copy (the shape one would fuse compute into).
# -----------------------------------------------------------------------------
def _copy_kernel(x_ref, o_ref):
    o_ref[...] = x_ref[...]


def _vmem_budget_bytes() -> int:
    # Derive the per-block budget from real VMEM capacity (~cap/32):
    #   v5e/v6e (128 MiB) -> ~4 MiB blocks, v7x (64 MiB) -> ~2 MiB blocks.
    try:
        cap = int(pltpu.get_tpu_info().vmem_capacity_bytes)
    except Exception:
        cap = 64 * 1024 * 1024
    return int(min(8 * 1024 * 1024, max(1 * 1024 * 1024, cap // 32)))


def _lane_dense_2d(total: int, itemsize: int, budget: int):
    """Collapse to (rows, cols) with cols a large multiple of 128 dividing total."""
    if total % 128 != 0:
        # TODO(synk): non-128-divisible element counts would need masked tail
        # stores; not reachable for conv-shaped NCHW activations used here.
        return 1, total
    max_cols = max(128, (budget // itemsize) // 128 * 128)
    cols = 128
    c = 256
    while c <= max_cols:
        if total % c == 0:
            cols = c
        c += 128
    return total // cols, cols


def pallas_identity_nchw(x: jax.Array) -> jax.Array:
    """Identity copy of an NCHW tensor via a lane-dense, cdiv-tiled VMEM pipeline."""
    itemsize = int(x.dtype.itemsize)
    total = int(x.size)
    budget = _vmem_budget_bytes()

    rows, cols = _lane_dense_2d(total, itemsize, budget)
    x2 = x.reshape(rows, cols)

    # Column block: multiple of 128 (or full extent), so an 8-row slab fits budget.
    if cols * itemsize * min(rows, 8) <= budget:
        block_cols = cols
    else:
        block_cols = max(128, (budget // (min(rows, 8) * itemsize)) // 128 * 128)
        block_cols = min(block_cols, cols)

    # Row block: multiple of 8 (or full extent), block bytes <= budget.
    if rows * block_cols * itemsize <= budget:
        block_rows = rows
    else:
        block_rows = max(8, (budget // (block_cols * itemsize)) // 8 * 8)
        block_rows = min(block_rows, rows)

    grid = (pl.cdiv(rows, block_rows), pl.cdiv(cols, block_cols))
    spec = pl.BlockSpec((block_rows, block_cols), lambda i, j: (i, j))

    # Pipelined footprint ~= 2 bufs x (in + out) x block_bytes; add headroom.
    block_bytes = block_rows * block_cols * itemsize
    vmem_limit = int(min(64 * 1024 * 1024, 4 * block_bytes + (2 << 20)))

    y2 = pl.pallas_call(
        _copy_kernel,
        out_shape=jax.ShapeDtypeStruct((rows, cols), x.dtype),
        grid=grid,
        in_specs=[spec],
        out_specs=spec,
        compiler_params=pltpu.CompilerParams(
            # Both axes independent: lets v7x shard the copy over its 2 TCs.
            dimension_semantics=("parallel", "parallel"),
            vmem_limit_bytes=vmem_limit,
        ),
        cost_estimate=pl.CostEstimate(
            flops=0, transcendentals=0, bytes_accessed=2 * total * itemsize
        ),
    )(x2)
    return y2.reshape(x.shape)


# -----------------------------------------------------------------------------
# Module wrapper (matches the empty PyTorch attnEncoder exactly).
# -----------------------------------------------------------------------------
class AttnEncoder:
    """JAX/Pallas port of the (empty) PyTorch attnEncoder module."""

    def __init__(self, in_channel: int, out_channel: int):
        # The PyTorch __init__ creates no layers/parameters.
        self.in_channel = in_channel
        self.out_channel = out_channel

    def forward(self, x: jax.Array):
        # The PyTorch forward() is empty and returns None.  Issuing any copy
        # here would be dead code (DCE'd under jit) / a wasted HBM round trip.
        del x
        return None

    __call__ = forward


if __name__ == "__main__":
    key = jax.random.PRNGKey(0)
    # Small NCHW input consistent with a conv-style encoder: [N, C, H, W].
    x = jax.random.normal(key, (2, 4, 16, 16), dtype=jnp.float32)

    # Primary path: single HBM->HBM DMA identity (no VMEM staging).
    y_dma = pallas_identity_dma(x)
    jax.block_until_ready(y_dma)
    assert y_dma.shape == x.shape and y_dma.dtype == x.dtype
    assert bool(jnp.all(y_dma == x))

    # Secondary path: cdiv-tiled, lane-dense VMEM copy (compute-fusable shape).
    y_tiled = pallas_identity_nchw(x)
    jax.block_until_ready(y_tiled)
    assert y_tiled.shape == x.shape and y_tiled.dtype == x.dtype
    assert bool(jnp.all(y_tiled == x))

    # Run the module wrapper; the reference forward returns None.
    module = AttnEncoder(in_channel=4, out_channel=8)
    out = module(x)
    assert out is None

    print("KERNEL_OK")
</pallas_src>

<mosaic_0001>
module attributes {stable_mosaic.version = 11 : i64} {
  func.func @_hbm_copy_kernel(%arg0: memref<2x4x16x16xf32, #tpu.memory_space<any>>, %arg1: memref<2x4x16x16xf32, #tpu.memory_space<any>>, %arg2: memref<!tpu.dma_semaphore, #tpu.memory_space<semaphore_mem>>) attributes {dimension_semantics = [], scalar_prefetch = 0 : i64, scratch_operands = 1 : i64, tpu.core_type = #tpu.core_type<tc>} {
    tpu.enqueue_dma source(%arg0 : memref<2x4x16x16xf32, #tpu.memory_space<any>>) target(%arg1 : memref<2x4x16x16xf32, #tpu.memory_space<any>>) target_semaphore(%arg2 : memref<!tpu.dma_semaphore, #tpu.memory_space<semaphore_mem>>)
    tpu.wait_dma2 semaphore(%arg2 : memref<!tpu.dma_semaphore, #tpu.memory_space<semaphore_mem>>) src(%arg0 : memref<2x4x16x16xf32, #tpu.memory_space<any>>) dst(%arg1 : memref<2x4x16x16xf32, #tpu.memory_space<any>>)
    return
  }
}

</mosaic_0001>

<bundles_post_ra>
// kernel: tpu_custom_call.1
= control target key start
LH: loop header
LB: loop body
LE: loop exit
PB: predicated region body
PF: predicated region fallthrough
CT: control target
= control target key end

     0   :  { %s30_s6 = smov [#allocation2]   ;;  %s31_s7 = smov 131072   ;;  %s49_s0 = inlined_call_operand.hbm [shape: f32[2,4,16,16], index: 0, kind: input, shape index: {}]   ;;  %s50_s1 = inlined_call_operand.hbm [shape: f32[2,4,16,16], index: 1, kind: output, shape index: {}]  }
   0x1   :  { %s32_s8 = smov 0  }
   0x2   :  { %12 = dma.general %s49_s0, 2048, %s50_s1, %s30_s6, %s31_s7, [#allocation4], %s32_s8, 0  }
   0x3   :  { %28 = dma.done.wait [#allocation2], 2048 }
   0x4   :  { %29 = vsyncadd [#allocation2], 4294965248 }
   0x5   :  { %18 = vsyncmov [#allocation2] }
   0x8   :  { %s19_s13 = vpop.sfrf %18 }
   0x9   :  { %p24_p0 = scmp.ne.s32.totalorder %s19_s13, 0 }
   0xb   :  { %23 = shalt.err (%p24_p0)  }

</bundles_post_ra>
